<compile_context>
chip_gen: v5e
topology: v5e:2x2
jax: 0.10.0
libtpu: 0.0.40
codegen_flags: <defaults>
</compile_context>

<pallas_src>
import functools

import jax
import jax.numpy as jnp
from jax.experimental import pallas as pl
from jax.experimental.pallas import tpu as pltpu

HIDDEN = 128
SUBLANE = 8
TILE_B_MAX = 512  # batch rows per grid step (sweep 256-1024 if batch is huge)


def _round_up(n, m):
    return ((n + m - 1) // m) * m


def _dqn_kernel(x_ref, ds_ref, w1a_ref, w1b_ref, b1_ref, w2_ref, b2_ref,
                w3_ref, b3_ref, o_ref, *, dot_dtype):
    """One batch tile of the fused 3-layer MLP.

    Weights/biases stay VMEM-resident across the grid (constant block index).
    relu runs on the VPU, tanh on the EUP, matmuls on the MXU with f32 accum.
    """
    x = x_ref[...]      # (TILE_B, state_dim) f32
    ds = ds_ref[...]    # (TILE_B, 1) f32

    def mm(a, w_ref):
        return jnp.dot(a.astype(dot_dtype), w_ref[...].astype(dot_dtype),
                       preferred_element_type=jnp.float32)

    # layer1 on cat((x, domain_shift), 1)  ==  x @ w1[:S] + domain_shift * w1[S]
    h1 = mm(x, w1a_ref) + ds * w1b_ref[...] + b1_ref[...]
    h1 = jnp.maximum(h1, 0.0)
    h2 = mm(h1, w2_ref) + b2_ref[...]
    h2 = jnp.maximum(h2, 0.0)
    h3 = mm(h2, w3_ref) + b3_ref[...]
    o_ref[...] = jnp.tanh(h3)


def prepare_params(params, state_dim):
    """One-time layout prep (outside the hot path): split the domain-shift row
    out of w1 and give biases a (1, N) layout. Stored params stay this way."""
    w1, b1, w2, b2, w3, b3 = params
    assert w1.shape == (state_dim + 1, HIDDEN), w1.shape
    assert w2.shape == (HIDDEN, HIDDEN), w2.shape
    assert w3.shape[0] == HIDDEN, w3.shape
    w1 = w1.astype(jnp.float32)
    w1a = w1[:state_dim]                 # (state_dim, 128)
    w1b = w1[state_dim:state_dim + 1]    # (1, 128) -- row multiplying domain_shift
    return (w1a, w1b,
            b1.reshape(1, HIDDEN).astype(jnp.float32),
            w2.astype(jnp.float32),
            b2.reshape(1, HIDDEN).astype(jnp.float32),
            w3.astype(jnp.float32),
            b3.reshape(1, -1).astype(jnp.float32))


@functools.partial(jax.jit, static_argnames=("use_bf16",))
def dqn_forward(x, domain_shift, prepared, *, use_bf16=False):
    """x: (B, state_dim) f32, domain_shift: (B,) f32 -> (B, action_dim) f32."""
    w1a, w1b, b1, w2, b2, w3, b3 = prepared
    B, state_dim = x.shape
    action_dim = w3.shape[1]

    # Batch tiling: tile must be a multiple of 8 (sublane); pad B up to a whole
    # number of tiles so every grid step sees a full block.
    tile_b = min(TILE_B_MAX, _round_up(B, SUBLANE))
    B_pad = _round_up(B, tile_b)
    grid = (B_pad // tile_b,)

    x = x.astype(jnp.float32)
    ds = domain_shift.reshape(-1, 1).astype(jnp.float32)
    if B_pad != B:
        x = jnp.pad(x, ((0, B_pad - B), (0, 0)))
        ds = jnp.pad(ds, ((0, B_pad - B), (0, 0)))

    def batch_spec(cols):
        return pl.BlockSpec((tile_b, cols), lambda i: (i, 0))

    def const_spec(rows, cols):
        # Same block index for every grid step -> stays VMEM-resident.
        return pl.BlockSpec((rows, cols), lambda i: (0, 0))

    kernel = functools.partial(
        _dqn_kernel, dot_dtype=jnp.bfloat16 if use_bf16 else jnp.float32)

    out = pl.pallas_call(
        kernel,
        out_shape=jax.ShapeDtypeStruct((B_pad, action_dim), jnp.float32),
        grid=grid,
        in_specs=[
            batch_spec(state_dim),            # x
            batch_spec(1),                    # domain_shift
            const_spec(state_dim, HIDDEN),    # w1a
            const_spec(1, HIDDEN),            # w1b
            const_spec(1, HIDDEN),            # b1
            const_spec(HIDDEN, HIDDEN),       # w2
            const_spec(1, HIDDEN),            # b2
            const_spec(HIDDEN, action_dim),   # w3
            const_spec(1, action_dim),        # b3
        ],
        out_specs=batch_spec(action_dim),
        compiler_params=pltpu.CompilerParams(
            dimension_semantics=("parallel",)),
    )(x, ds, w1a, w1b, b1, w2, b2, w3, b3)

    return out[:B] if B_pad != B else out


def init_dqn_params(key, state_dim, action_dim, domain_shift_input_dim=1):
    """Deterministic init mirroring nn.Linear default (uniform +/- 1/sqrt(fan_in))."""
    in_dim = state_dim + domain_shift_input_dim
    ks = jax.random.split(key, 6)

    def linear(kw, kb, fan_in, fan_out):
        bound = 1.0 / jnp.sqrt(jnp.float32(fan_in))
        w = jax.random.uniform(kw, (fan_in, fan_out), jnp.float32, -bound, bound)
        b = jax.random.uniform(kb, (fan_out,), jnp.float32, -bound, bound)
        return w, b

    w1, b1 = linear(ks[0], ks[1], in_dim, HIDDEN)
    w2, b2 = linear(ks[2], ks[3], HIDDEN, HIDDEN)
    w3, b3 = linear(ks[4], ks[5], HIDDEN, action_dim)
    return (w1, b1, w2, b2, w3, b3)


if __name__ == "__main__":
    state_dim = 8
    action_dim = 4
    batch = 2

    key = jax.random.PRNGKey(0)
    kx, kd, kp = jax.random.split(key, 3)
    x = jax.random.normal(kx, (batch, state_dim), jnp.float32)
    domain_shift = jax.random.normal(kd, (batch,), jnp.float32)

    params = init_dqn_params(kp, state_dim, action_dim)
    prepared = prepare_params(params, state_dim)

    out = dqn_forward(x, domain_shift, prepared, use_bf16=False)
    jax.block_until_ready(out)
    assert out.shape == (batch, action_dim)

    # Pure-JAX reference of the original PyTorch forward for correctness.
    w1, b1, w2, b2, w3, b3 = params
    xin = jnp.concatenate([x, domain_shift.reshape(-1, 1)], axis=1)
    ref = jnp.maximum(xin @ w1 + b1, 0.0)
    ref = jnp.maximum(ref @ w2 + b2, 0.0)
    ref = jnp.tanh(ref @ w3 + b3)
    assert bool(jnp.allclose(out, ref, atol=1e-5, rtol=1e-5))
    assert bool(jnp.all(jnp.abs(out) <= 1.0))  # tanh range sanity check
    print("KERNEL_OK")
</pallas_src>

<mosaic_0001>
module attributes {stable_mosaic.version = 11 : i64} {
  func.func @_dqn_kernel(%arg0: i32, %arg1: memref<8x8xf32, #tpu.memory_space<vmem>>, %arg2: memref<8x1xf32, #tpu.memory_space<vmem>>, %arg3: memref<8x128xf32, #tpu.memory_space<vmem>>, %arg4: memref<1x128xf32, #tpu.memory_space<vmem>>, %arg5: memref<1x128xf32, #tpu.memory_space<vmem>>, %arg6: memref<128x128xf32, #tpu.memory_space<vmem>>, %arg7: memref<1x128xf32, #tpu.memory_space<vmem>>, %arg8: memref<128x4xf32, #tpu.memory_space<vmem>>, %arg9: memref<1x4xf32, #tpu.memory_space<vmem>>, %arg10: memref<8x4xf32, #tpu.memory_space<vmem>>) attributes {dimension_semantics = [#tpu.dimension_semantics<parallel>], iteration_bounds = array<i64: 1>, scalar_prefetch = 0 : i64, scratch_operands = 0 : i64, tpu.core_type = #tpu.core_type<tc>, window_params = [{transform_indices = @transform_0, window_bounds = array<i64: 8, 8>}, {transform_indices = @transform_1, window_bounds = array<i64: 8, 1>}, {pipeline_mode = #tpu.pipeline_mode<synchronous>, transform_indices = @transform_2, window_bounds = array<i64: 8, 128>}, {pipeline_mode = #tpu.pipeline_mode<synchronous>, transform_indices = @transform_3, window_bounds = array<i64: 1, 128>}, {pipeline_mode = #tpu.pipeline_mode<synchronous>, transform_indices = @transform_4, window_bounds = array<i64: 1, 128>}, {pipeline_mode = #tpu.pipeline_mode<synchronous>, transform_indices = @transform_5, window_bounds = array<i64: 128, 128>}, {pipeline_mode = #tpu.pipeline_mode<synchronous>, transform_indices = @transform_6, window_bounds = array<i64: 1, 128>}, {pipeline_mode = #tpu.pipeline_mode<synchronous>, transform_indices = @transform_7, window_bounds = array<i64: 128, 4>}, {pipeline_mode = #tpu.pipeline_mode<synchronous>, transform_indices = @transform_8, window_bounds = array<i64: 1, 4>}, {transform_indices = @transform_9, window_bounds = array<i64: 8, 4>}]} {
    %c0 = arith.constant 0 : index
    %c0_0 = arith.constant 0 : index
    %0 = vector.load %arg1[%c0, %c0_0] : memref<8x8xf32, #tpu.memory_space<vmem>>, vector<8x8xf32>
    %c0_1 = arith.constant 0 : index
    %c0_2 = arith.constant 0 : index
    %1 = vector.load %arg2[%c0_1, %c0_2] : memref<8x1xf32, #tpu.memory_space<vmem>>, vector<8x1xf32>
    %c0_3 = arith.constant 0 : index
    %c0_4 = arith.constant 0 : index
    %2 = vector.load %arg3[%c0_3, %c0_4] : memref<8x128xf32, #tpu.memory_space<vmem>>, vector<8x128xf32>
    %cst = arith.constant dense<0.000000e+00> : vector<8x128xf32>
    %3 = tpu.matmul %0, %2, %cst {dimension_numbers = #tpu.dot_dimension_numbers<[1], [0], [0], [1], [0, 0, 1, 1], [], []>} : vector<8x8xf32>, vector<8x128xf32>, vector<8x128xf32> -> vector<8x128xf32>
    %c0_5 = arith.constant 0 : index
    %c0_6 = arith.constant 0 : index
    %4 = vector.load %arg4[%c0_5, %c0_6] : memref<1x128xf32, #tpu.memory_space<vmem>>, vector<1x128xf32>
    %5 = vector.broadcast %1 : vector<8x1xf32> to vector<8x128xf32>
    %6 = vector.broadcast %4 : vector<1x128xf32> to vector<8x128xf32>
    %7 = arith.mulf %5, %6 : vector<8x128xf32>
    %8 = arith.addf %3, %7 : vector<8x128xf32>
    %c0_7 = arith.constant 0 : index
    %c0_8 = arith.constant 0 : index
    %9 = vector.load %arg5[%c0_7, %c0_8] : memref<1x128xf32, #tpu.memory_space<vmem>>, vector<1x128xf32>
    %10 = vector.broadcast %9 : vector<1x128xf32> to vector<8x128xf32>
    %11 = arith.addf %8, %10 : vector<8x128xf32>
    %cst_9 = arith.constant 0.000000e+00 : f32
    %12 = vector.broadcast %cst_9 : f32 to vector<8x128xf32>
    %13 = arith.maximumf %11, %12 : vector<8x128xf32>
    %c0_10 = arith.constant 0 : index
    %c0_11 = arith.constant 0 : index
    %14 = vector.load %arg6[%c0_10, %c0_11] : memref<128x128xf32, #tpu.memory_space<vmem>>, vector<128x128xf32>
    %cst_12 = arith.constant dense<0.000000e+00> : vector<8x128xf32>
    %15 = tpu.matmul %13, %14, %cst_12 {dimension_numbers = #tpu.dot_dimension_numbers<[1], [0], [0], [1], [0, 0, 1, 1], [], []>} : vector<8x128xf32>, vector<128x128xf32>, vector<8x128xf32> -> vector<8x128xf32>
    %c0_13 = arith.constant 0 : index
    %c0_14 = arith.constant 0 : index
    %16 = vector.load %arg7[%c0_13, %c0_14] : memref<1x128xf32, #tpu.memory_space<vmem>>, vector<1x128xf32>
    %17 = vector.broadcast %16 : vector<1x128xf32> to vector<8x128xf32>
    %18 = arith.addf %15, %17 : vector<8x128xf32>
    %cst_15 = arith.constant 0.000000e+00 : f32
    %19 = vector.broadcast %cst_15 : f32 to vector<8x128xf32>
    %20 = arith.maximumf %18, %19 : vector<8x128xf32>
    %c0_16 = arith.constant 0 : index
    %c0_17 = arith.constant 0 : index
    %21 = vector.load %arg8[%c0_16, %c0_17] : memref<128x4xf32, #tpu.memory_space<vmem>>, vector<128x4xf32>
    %cst_18 = arith.constant dense<0.000000e+00> : vector<8x4xf32>
    %22 = tpu.matmul %20, %21, %cst_18 {dimension_numbers = #tpu.dot_dimension_numbers<[1], [0], [0], [1], [0, 0, 1, 1], [], []>} : vector<8x128xf32>, vector<128x4xf32>, vector<8x4xf32> -> vector<8x4xf32>
    %c0_19 = arith.constant 0 : index
    %c0_20 = arith.constant 0 : index
    %23 = vector.load %arg9[%c0_19, %c0_20] : memref<1x4xf32, #tpu.memory_space<vmem>>, vector<1x4xf32>
    %24 = vector.broadcast %23 : vector<1x4xf32> to vector<8x4xf32>
    %25 = arith.addf %22, %24 : vector<8x4xf32>
    %26 = math.tanh %25 : vector<8x4xf32>
    %c0_21 = arith.constant 0 : index
    %c0_22 = arith.constant 0 : index
    %27 = vector.load %arg10[%c0_21, %c0_22] : memref<8x4xf32, #tpu.memory_space<vmem>>, vector<8x4xf32>
    tpu.vector_store %arg10[%c0_21, %c0_22], %26 {strides = array<i32>} : memref<8x4xf32, #tpu.memory_space<vmem>>, vector<8x4xf32>,
    return
  }
  func.func @transform_0(%arg0: i32) -> (i32, i32) {
    %c0_i32 = arith.constant 0 : i32
    %c0_i32_0 = arith.constant 0 : i32
    return %arg0, %c0_i32 : i32, i32
  }
  func.func @transform_1(%arg0: i32) -> (i32, i32) {
    %c0_i32 = arith.constant 0 : i32
    %c0_i32_0 = arith.constant 0 : i32
    return %arg0, %c0_i32 : i32, i32
  }
  func.func @transform_2(%arg0: i32) -> (i32, i32) {
    %c0_i32 = arith.constant 0 : i32
    %c0_i32_0 = arith.constant 0 : i32
    %c0_i32_1 = arith.constant 0 : i32
    return %c0_i32, %c0_i32_0 : i32, i32
  }
  func.func @transform_3(%arg0: i32) -> (i32, i32) {
    %c0_i32 = arith.constant 0 : i32
    %c0_i32_0 = arith.constant 0 : i32
    %c0_i32_1 = arith.constant 0 : i32
    return %c0_i32, %c0_i32_0 : i32, i32
  }
  func.func @transform_4(%arg0: i32) -> (i32, i32) {
    %c0_i32 = arith.constant 0 : i32
    %c0_i32_0 = arith.constant 0 : i32
    %c0_i32_1 = arith.constant 0 : i32
    return %c0_i32, %c0_i32_0 : i32, i32
  }
  func.func @transform_5(%arg0: i32) -> (i32, i32) {
    %c0_i32 = arith.constant 0 : i32
    %c0_i32_0 = arith.constant 0 : i32
    %c0_i32_1 = arith.constant 0 : i32
    return %c0_i32, %c0_i32_0 : i32, i32
  }
  func.func @transform_6(%arg0: i32) -> (i32, i32) {
    %c0_i32 = arith.constant 0 : i32
    %c0_i32_0 = arith.constant 0 : i32
    %c0_i32_1 = arith.constant 0 : i32
    return %c0_i32, %c0_i32_0 : i32, i32
  }
  func.func @transform_7(%arg0: i32) -> (i32, i32) {
    %c0_i32 = arith.constant 0 : i32
    %c0_i32_0 = arith.constant 0 : i32
    %c0_i32_1 = arith.constant 0 : i32
    return %c0_i32, %c0_i32_0 : i32, i32
  }
  func.func @transform_8(%arg0: i32) -> (i32, i32) {
    %c0_i32 = arith.constant 0 : i32
    %c0_i32_0 = arith.constant 0 : i32
    %c0_i32_1 = arith.constant 0 : i32
    return %c0_i32, %c0_i32_0 : i32, i32
  }
  func.func @transform_9(%arg0: i32) -> (i32, i32) {
    %c0_i32 = arith.constant 0 : i32
    %c0_i32_0 = arith.constant 0 : i32
    return %arg0, %c0_i32 : i32, i32
  }
}

</mosaic_0001>

<bundles_post_ra>
// kernel: dqn_forward.1
= control target key start
LH: loop header
LB: loop body
LE: loop exit
PB: predicated region body
PF: predicated region fallthrough
CT: control target
= control target key end

     0   :  { %vm45_vm0 = vcmask 64512   ;;  %v172_v2 = vmov 0   ;;  %vm157_vm1 = vcmask 31744   ;;  %s343_s2 = inlined_call_operand.vmem [shape: f32[8,128], index: 2, kind: input, shape index: {}]   ;;  %s344_s0 = inlined_call_operand.vmem [shape: f32[8,8], index: 0, kind: input, shape index: {}]   ;;  %s345_s1 = inlined_call_operand.vmem [shape: f32[8,1], index: 1, kind: input, shape index: {}]   ;;  %s346_s5 = inlined_call_operand.vmem [shape: f32[128,128], index: 5, kind: input, shape index: {}]   ;;  %s347_s3 = inlined_call_operand.vmem [shape: f32[1,128], index: 3, kind: input, shape index: {}]   ;;  %s348_s4 = inlined_call_operand.vmem [shape: f32[1,128], index: 4, kind: input, shape index: {}]   ;;  %s349_s6 = inlined_call_operand.vmem [shape: f32[1,128], index: 6, kind: input, shape index: {}]   ;;  %s350_s7 = inlined_call_operand.vmem [shape: f32[128,4], index: 7, kind: input, shape index: {}]   ;;  %s351_s8 = inlined_call_operand.vmem [shape: f32[1,4], index: 8, kind: input, shape index: {}]   ;;  %s352_s9 = inlined_call_operand.vmem [shape: f32[8,4], index: 9, kind: output, shape index: {}]  }
   0x1   :  { %v34_v0 = vld [vmem:[%s343_s2] sm:$0xff]  ;;  %165 = vset.pattern.permute.xlu0 %v172_v2  ;;  %v90_v4 = vld [vmem:[%s346_s5 + $0x78] sm:$0xff]  ;;  %v89_v5 = vld [vmem:[%s346_s5 + $0x70] sm:$0xff] }
   0x2   :  { %v32_v1 = vld [vmem:[%s344_s0] sm:$0xff]  ;;  %64 = vmatpush.msra.mxu0 %v34_v0  ;;  %95 = vmatpush.msra.mxu1 %v90_v4  ;;  %v88_v6 = vld [vmem:[%s346_s5 + $0x68] sm:$0xff]  ;;  %v86_v8 = vld [vmem:[%s346_s5 + $0x58] sm:$0xff] }
   0x3   :  { %v33_v3 = vld [vmem:[%s345_s1] sm:$0xff]  ;;  %163 = vmatmul.msk.f32.vlgmr.msra.gmra.mxu0 %vm45_vm0, %v32_v1  ;;  %v85_v9 = vld [vmem:[%s346_s5 + $0x50] sm:$0xff]  ;;  %v84_v10 = vld [vmem:[%s346_s5 + $0x48] sm:$0xff] }
   0x4   :  { %38 = vperm.xlu0 %165, %v33_v3   ;;  %96 = vmatpush.msra.mxu1 %v89_v5  ;;  %v87_v7 = vld [vmem:[%s346_s5 + $0x60] sm:$0xff]  ;;  %v82_v12 = vld [vmem:[%s346_s5 + $0x38] sm:$0xff]  ;;  %v81_v13 = vld [vmem:[%s346_s5 + $0x30] sm:$0xff] }
   0x5   :  { %v83_v11 = vld [vmem:[%s346_s5 + $0x40] sm:$0xff]  ;;  %v80_v14 = vld [vmem:[%s346_s5 + $0x28] sm:$0xff]  ;;  %v78_v16 = vld [vmem:[%s346_s5 + $0x18] sm:$0xff] }
   0x6   :  { %97 = vmatpush.msra.mxu1 %v88_v6  ;;  %v79_v15 = vld [vmem:[%s346_s5 + $0x20] sm:$0xff]  ;;  %v77_v17 = vld [vmem:[%s346_s5 + $0x10] sm:$0xff]  ;;  %v76_v18 = vld [vmem:[%s346_s5 + $0x8] sm:$0xff] }
   0x7   :  { %v75_v19 = vld [vmem:[%s346_s5] sm:$0xff]  ;;  %v131_v20 = vld [vmem:[%s350_s7 + $0x78] sm:$0xff]  ;;  %v130_v21 = vld [vmem:[%s350_s7 + $0x70] sm:$0xff] }
   0x8   :  { %98 = vmatpush.msra.mxu1 %v87_v7  ;;  %136 = vmatpush.msra.mxu2 %v131_v20  ;;  %v129_v22 = vld [vmem:[%s350_s7 + $0x68] sm:$0xff]  ;;  %v128_v23 = vld [vmem:[%s350_s7 + $0x60] sm:$0xff]  ;;  %v127_v24 = vld [vmem:[%s350_s7 + $0x58] sm:$0xff] }
   0x9   :  { %v126_v25 = vld [vmem:[%s350_s7 + $0x50] sm:$0xff]  ;;  %v125_v26 = vld [vmem:[%s350_s7 + $0x48] sm:$0xff]  ;;  %v124_v27 = vld [vmem:[%s350_s7 + $0x40] sm:$0xff] }
   0xa   :  { %99 = vmatpush.msra.mxu1 %v86_v8  ;;  %137 = vmatpush.msra.mxu2 %v130_v21  ;;  %v123_v28 = vld [vmem:[%s350_s7 + $0x38] sm:$0xff]  ;;  %v122_v29 = vld [vmem:[%s350_s7 + $0x30] sm:$0xff]  ;;  %v166_v30 = vld [vmem:[%s347_s3] ss:$0 sm:$0xff] }
   0xb   :  { %v121_v31 = vld [vmem:[%s350_s7 + $0x28] sm:$0xff]  ;;  %v120_v33 = vld [vmem:[%s350_s7 + $0x20] sm:$0xff]  ;;  %v119_v35 = vld [vmem:[%s350_s7 + $0x18] sm:$0xff] }
   0xc   :  { %100 = vmatpush.msra.mxu1 %v85_v9  ;;  %138 = vmatpush.msra.mxu2 %v129_v22  ;;  %v167_v36 = vld [vmem:[%s348_s4] ss:$0 sm:$0xff]  ;;  %v118_v41 = vld [vmem:[%s350_s7 + $0x10] sm:$0xff]  ;;  %v117_v42 = vld [vmem:[%s350_s7 + $0x8] sm:$0xff] }
   0xd   :  { %v116_v43 = vld [vmem:[%s350_s7] sm:$0xff] }
   0xe   :  { %101 = vmatpush.msra.mxu1 %v84_v10  ;;  %139 = vmatpush.msra.mxu2 %v128_v23  ;;  %v168_v44 = vld [vmem:[%s349_s6] ss:$0 sm:$0xff] }
   0xf   :  { %v169_v48 = vld [vmem:[%s351_s8] ss:$0 sm:$0xff] }
  0x10   :  { %102 = vmatpush.msra.mxu1 %v83_v11  ;;  %140 = vmatpush.msra.mxu2 %v127_v24 }
  0x12   :  { %103 = vmatpush.msra.mxu1 %v82_v12  ;;  %141 = vmatpush.msra.mxu2 %v126_v25 }
  0x14   :  { %104 = vmatpush.msra.mxu1 %v81_v13  ;;  %142 = vmatpush.msra.mxu2 %v125_v26 }
  0x16   :  { %105 = vmatpush.msra.mxu1 %v80_v14  ;;  %143 = vmatpush.msra.mxu2 %v124_v27 }
  0x18   :  { %106 = vmatpush.msra.mxu1 %v79_v15  ;;  %144 = vmatpush.msra.mxu2 %v123_v28 }
  0x1a   :  { %107 = vmatpush.msra.mxu1 %v78_v16  ;;  %145 = vmatpush.msra.mxu2 %v122_v29 }
  0x1c   :  { %108 = vmatpush.msra.mxu1 %v77_v17  ;;  %146 = vmatpush.msra.mxu2 %v121_v31 }
  0x1e   :  { %109 = vmatpush.msra.mxu1 %v76_v18  ;;  %147 = vmatpush.msra.mxu2 %v120_v33 }
  0x20   :  { %110 = vmatpush.msra.mxu1 %v75_v19  ;;  %148 = vmatpush.msra.mxu2 %v119_v35 }
  0x22   :  { %149 = vmatpush.msra.mxu2 %v118_v41 }
  0x24   :  { %150 = vmatpush.msra.mxu2 %v117_v42 }
  0x26   :  { %151 = vmatpush.msra.mxu2 %v116_v43 }
  0x76   :  { %v39_v32 = vpop.permute.xlu0 %38 }
  0x77   :  { %v44_v34 = vmul.f32 %v166_v30, %v39_v32 }
  0x80   :  { %v66_v37 = vpop.f32.mrf.mxu0 }
  0x81   :  { %v67_v38 = vadd.f32 %v66_v37, %v44_v34 }
  0x83   :  { %v73_v39 = vadd.f32 %v167_v36, %v67_v38 }
  0x85   :  { %v74_v40 = vmax.f32 %v73_v39, 0.0 }
  0x87   :  { %111 = vmatmul.f32.vlgmr.msra.gmra.mxu1 %v74_v40 }
 0x104   :  { %v112_v45 = vpop.f32.mrf.mxu1 }
 0x105   :  { %v113_v46 = vadd.f32 %v168_v44, %v112_v45 }
 0x107   :  { %v115_v47 = vmax.f32 %v113_v46, 0.0 }
 0x109   :  { %152 = vmatmul.f32.vlgmr.msra.gmra.mxu2 %v115_v47 }
 0x18c   :  { %v153_v49 = vpop.f32.mrf.mxu2 }
 0x18d   :  { %v154_v50 = vadd.f32 %v169_v48, %v153_v49 }
 0x18f   :  { %170 = vtanh.f32 %v154_v50 }
 0x195   :  { %v171_v51 = vpop.eup %170 }
 0x196   :  { %158 = vst.msk [vmem:[%s352_s9] sm:$0xff] %vm157_vm1, %v171_v51 }

</bundles_post_ra>
